<compile_context>
chip_gen: v7x
topology: tpu7x:2x2x1
jax: 0.10.0
libtpu: 0.0.40
codegen_flags: <defaults>
</compile_context>

<pallas_src>
import functools

import jax
import jax.numpy as jnp
from jax.experimental import pallas as pl
from jax.experimental.pallas import tpu as pltpu


def prepare_ltc_params(dt, w_in, b_in, w_hh, b_hh, log_tau):
    """One-time parameter prep (hoist softplus / bias fusion out of the hot path).

    Returns (w_in, w_hh, b_cat, alpha) ready for `ltc_sequence_forward`.
    """
    f32 = jnp.float32
    tau = jax.nn.softplus(log_tau.astype(f32)) + jnp.float32(0.001)
    alpha = (jnp.asarray(dt, f32) / tau).reshape(1, -1)          # (1, H)
    b_cat = (b_in.astype(f32) + b_hh.astype(f32)).reshape(1, -1)  # (1, H)
    return w_in.astype(f32), w_hh.astype(f32), b_cat, alpha


@functools.partial(jax.jit, static_argnames=("time_block",))
def ltc_sequence_forward(x_seq, h0, w_in, w_hh, b_cat, alpha, *, time_block=None):
    """Run the LTC cell over a whole sequence in one fused Pallas kernel.

    x_seq: (T, B, I) f32, h0: (B, H) f32, w_in: (I, H), w_hh: (H, H),
    b_cat: (1, H) = b_in + b_hh, alpha: (1, H) = dt / (softplus(log_tau)+1e-3).
    Returns (trajectory (T, B, H), final hidden state (B, H)).
    """
    T, B, I = x_seq.shape
    H = h0.shape[1]
    f32 = jnp.float32

    TT = T if time_block is None else int(time_block)
    assert T % TT == 0, "time_block must divide the sequence length"
    n_blocks = T // TT

    # Row-major (T, B, I) -> (T*B, I) is a free bitcast reshape; lets the kernel
    # do the whole block's input projection as one 2-D matmul.
    x2d = x_seq.astype(f32).reshape(T * B, I)
    h0 = h0.astype(f32)

    def kernel(x_ref, h0_ref, w_in_ref, w_hh_ref, b_ref, alpha_ref,
               out_ref, h_scr):
        # h_scr (B, H) carries the hidden state across grid (time-block) steps.
        @pl.when(pl.program_id(0) == 0)
        def _():
            h_scr[...] = h0_ref[...]

        # Input projection for every step in this block: one MXU pass,
        # independent of the recurrence.  Bias fused here (hoisted).
        xproj = jnp.dot(x_ref[...], w_in_ref[...],
                        preferred_element_type=jnp.float32) + b_ref[...]

        w_hh = w_hh_ref[...]
        # Hoist the (1,H)->(B,H) broadcast above the time loop.
        alpha_b = jnp.broadcast_to(alpha_ref[...], (B, H))

        h = h_scr[...]
        # TT is small; a static unrolled loop keeps every slice/store index
        # static (rows t*B:(t+1)*B align with sublane tiles for B=8).
        # TODO(synk): for very large time blocks switch to lax.fori_loop over a
        # VMEM-resident xproj scratch to bound live ranges.
        for t in range(TT):
            pre = xproj[t * B:(t + 1) * B, :] + jnp.dot(
                h, w_hh, preferred_element_type=jnp.float32)
            h = h + alpha_b * (jnp.tanh(pre) - h)
            out_ref[t] = h
        h_scr[...] = h

    flops = T * (2 * B * I * H + 2 * B * H * H + 5 * B * H)
    bytes_accessed = 4 * (T * B * I + T * B * H + I * H + H * H
                          + 2 * H + 2 * B * H)

    traj = pl.pallas_call(
        kernel,
        out_shape=jax.ShapeDtypeStruct((T, B, H), f32),
        grid_spec=pltpu.PrefetchScalarGridSpec(
            num_scalar_prefetch=0,
            grid=(n_blocks,),
            in_specs=[
                pl.BlockSpec((TT * B, I), lambda i: (i, 0)),   # x block (streamed)
                pl.BlockSpec((B, H), lambda i: (0, 0)),        # h0 (resident)
                pl.BlockSpec((I, H), lambda i: (0, 0)),        # W_in (resident)
                pl.BlockSpec((H, H), lambda i: (0, 0)),        # W_hh (resident)
                pl.BlockSpec((1, H), lambda i: (0, 0)),        # fused bias
                pl.BlockSpec((1, H), lambda i: (0, 0)),        # alpha = dt/tau
            ],
            out_specs=pl.BlockSpec((TT, B, H), lambda i: (i, 0, 0)),
            scratch_shapes=[pltpu.VMEM((B, H), f32)],          # carried hidden state
        ),
        compiler_params=pltpu.CompilerParams(
            dimension_semantics=("arbitrary",),   # sequential recurrence
            vmem_limit_bytes=32 << 20,            # explicit budget (v7x-safe)
        ),
        cost_estimate=pl.CostEstimate(
            flops=flops,
            transcendentals=T * B * H,
            bytes_accessed=bytes_accessed,
        ),
    )(x2d, h0, w_in, w_hh, b_cat, alpha)

    return traj, traj[-1]


# ------------------------------- reference ----------------------------------
def ltc_cell_ref(x, h, dt, w_in, b_in, w_hh, b_hh, log_tau):
    tau = jax.nn.softplus(log_tau) + 0.001
    pre = x @ w_in + b_in + h @ w_hh + b_hh
    return (1.0 - dt / tau) * h + (dt / tau) * jnp.tanh(pre)


def ltc_sequence_ref(x_seq, h0, dt, w_in, b_in, w_hh, b_hh, log_tau):
    h = h0
    outs = []
    for t in range(x_seq.shape[0]):
        h = ltc_cell_ref(x_seq[t], h, dt, w_in, b_in, w_hh, b_hh, log_tau)
        outs.append(h)
    return jnp.stack(outs), h


if __name__ == "__main__":
    # Small shapes consistent with the module: seq=12, batch=8, input=16, hidden=32.
    T, B, I, H = 12, 8, 16, 32
    key = jax.random.PRNGKey(0)
    kx, kh, k1, k2, k3, k4 = jax.random.split(key, 6)

    x_seq = jax.random.normal(kx, (T, B, I), dtype=jnp.float32)
    h0 = jax.random.normal(kh, (B, H), dtype=jnp.float32)
    dt = 0.1

    # Deterministic parameter init (matching nn.Linear's uniform fan-in scheme).
    bound_in = 1.0 / jnp.sqrt(I)
    bound_hh = 1.0 / jnp.sqrt(H)
    w_in = jax.random.uniform(k1, (I, H), jnp.float32, -bound_in, bound_in)
    b_in = jax.random.uniform(k2, (H,), jnp.float32, -bound_in, bound_in)
    w_hh = jax.random.uniform(k3, (H, H), jnp.float32, -bound_hh, bound_hh)
    b_hh = jax.random.uniform(k4, (H,), jnp.float32, -bound_hh, bound_hh)
    log_tau = jnp.zeros((H,), dtype=jnp.float32)  # nn.Parameter(torch.zeros(H))

    # One-time parameter prep (hoisted out of the per-call path).
    w_in_p, w_hh_p, b_cat, alpha = prepare_ltc_params(
        dt, w_in, b_in, w_hh, b_hh, log_tau)

    traj, h_final = ltc_sequence_forward(x_seq, h0, w_in_p, w_hh_p, b_cat, alpha)
    traj = jax.block_until_ready(traj)
    h_final = jax.block_until_ready(h_final)

    traj_ref, h_final_ref = ltc_sequence_ref(
        x_seq, h0, dt, w_in, b_in, w_hh, b_hh, log_tau)

    assert traj.shape == (T, B, H)
    assert h_final.shape == (B, H)
    assert jnp.allclose(traj, traj_ref, atol=1e-4, rtol=1e-4), \
        "trajectory mismatch vs reference"
    assert jnp.allclose(h_final, h_final_ref, atol=1e-4, rtol=1e-4), \
        "final state mismatch vs reference"

    print("KERNEL_OK")
</pallas_src>

<mosaic_0001>
module attributes {stable_mosaic.version = 11 : i64} {
  func.func @kernel(%arg0: i32, %arg1: memref<96x16xf32, #tpu.memory_space<vmem>>, %arg2: memref<8x32xf32, #tpu.memory_space<vmem>>, %arg3: memref<16x32xf32, #tpu.memory_space<vmem>>, %arg4: memref<32x32xf32, #tpu.memory_space<vmem>>, %arg5: memref<1x32xf32, #tpu.memory_space<vmem>>, %arg6: memref<1x32xf32, #tpu.memory_space<vmem>>, %arg7: memref<12x8x32xf32, #tpu.memory_space<vmem>>, %arg8: memref<8x32xf32, #tpu.memory_space<vmem>>) attributes {dimension_semantics = [#tpu.dimension_semantics<arbitrary>], iteration_bounds = array<i64: 1>, scalar_prefetch = 0 : i64, scratch_operands = 1 : i64, tpu.core_type = #tpu.core_type<tc>, window_params = [{transform_indices = @transform_0, window_bounds = array<i64: 96, 16>}, {pipeline_mode = #tpu.pipeline_mode<synchronous>, transform_indices = @transform_1, window_bounds = array<i64: 8, 32>}, {pipeline_mode = #tpu.pipeline_mode<synchronous>, transform_indices = @transform_2, window_bounds = array<i64: 16, 32>}, {pipeline_mode = #tpu.pipeline_mode<synchronous>, transform_indices = @transform_3, window_bounds = array<i64: 32, 32>}, {pipeline_mode = #tpu.pipeline_mode<synchronous>, transform_indices = @transform_4, window_bounds = array<i64: 1, 32>}, {pipeline_mode = #tpu.pipeline_mode<synchronous>, transform_indices = @transform_5, window_bounds = array<i64: 1, 32>}, {transform_indices = @transform_6, window_bounds = array<i64: 12, 8, 32>}]} {
    %c0_i32 = arith.constant 0 : i32
    %0 = arith.cmpi eq, %arg0, %c0_i32 : i32
    %1 = arith.extui %0 : i1 to i32
    %c0_i32_0 = arith.constant 0 : i32
    %2 = arith.cmpi ne, %1, %c0_i32_0 : i32
    scf.if %2 {
      %c0_51 = arith.constant 0 : index
      %c0_52 = arith.constant 0 : index
      %135 = vector.load %arg2[%c0_51, %c0_52] : memref<8x32xf32, #tpu.memory_space<vmem>>, vector<8x32xf32>
      %c0_53 = arith.constant 0 : index
      %c0_54 = arith.constant 0 : index
      %136 = vector.load %arg8[%c0_53, %c0_54] : memref<8x32xf32, #tpu.memory_space<vmem>>, vector<8x32xf32>
      tpu.vector_store %arg8[%c0_53, %c0_54], %135 {strides = array<i32>} : memref<8x32xf32, #tpu.memory_space<vmem>>, vector<8x32xf32>,
    } else {
    }
    %c0 = arith.constant 0 : index
    %c0_1 = arith.constant 0 : index
    %3 = vector.load %arg1[%c0, %c0_1] : memref<96x16xf32, #tpu.memory_space<vmem>>, vector<96x16xf32>
    %c0_2 = arith.constant 0 : index
    %c0_3 = arith.constant 0 : index
    %4 = vector.load %arg3[%c0_2, %c0_3] : memref<16x32xf32, #tpu.memory_space<vmem>>, vector<16x32xf32>
    %cst = arith.constant dense<0.000000e+00> : vector<96x32xf32>
    %5 = tpu.matmul %3, %4, %cst {dimension_numbers = #tpu.dot_dimension_numbers<[1], [0], [0], [1], [0, 0, 1, 1], [], []>} : vector<96x16xf32>, vector<16x32xf32>, vector<96x32xf32> -> vector<96x32xf32>
    %c0_4 = arith.constant 0 : index
    %c0_5 = arith.constant 0 : index
    %6 = vector.load %arg5[%c0_4, %c0_5] : memref<1x32xf32, #tpu.memory_space<vmem>>, vector<1x32xf32>
    %7 = vector.broadcast %6 : vector<1x32xf32> to vector<96x32xf32>
    %8 = arith.addf %5, %7 : vector<96x32xf32>
    %c0_6 = arith.constant 0 : index
    %c0_7 = arith.constant 0 : index
    %9 = vector.load %arg4[%c0_6, %c0_7] : memref<32x32xf32, #tpu.memory_space<vmem>>, vector<32x32xf32>
    %c0_8 = arith.constant 0 : index
    %c0_9 = arith.constant 0 : index
    %10 = vector.load %arg6[%c0_8, %c0_9] : memref<1x32xf32, #tpu.memory_space<vmem>>, vector<1x32xf32>
    %11 = vector.shape_cast %10 : vector<1x32xf32> to vector<1x32xf32>
    %12 = vector.broadcast %11 : vector<1x32xf32> to vector<8x32xf32>
    %c0_10 = arith.constant 0 : index
    %c0_11 = arith.constant 0 : index
    %13 = vector.load %arg8[%c0_10, %c0_11] : memref<8x32xf32, #tpu.memory_space<vmem>>, vector<8x32xf32>
    %14 = vector.extract_strided_slice %8 {offsets = [0, 0], sizes = [8, 32], strides = [1, 1]} : vector<96x32xf32> to vector<8x32xf32>
    %cst_12 = arith.constant dense<0.000000e+00> : vector<8x32xf32>
    %15 = tpu.matmul %13, %9, %cst_12 {dimension_numbers = #tpu.dot_dimension_numbers<[1], [0], [0], [1], [0, 0, 1, 1], [], []>} : vector<8x32xf32>, vector<32x32xf32>, vector<8x32xf32> -> vector<8x32xf32>
    %16 = arith.addf %14, %15 : vector<8x32xf32>
    %17 = math.tanh %16 : vector<8x32xf32>
    %18 = arith.subf %17, %13 : vector<8x32xf32>
    %19 = arith.mulf %12, %18 : vector<8x32xf32>
    %20 = arith.addf %13, %19 : vector<8x32xf32>
    %c0_13 = arith.constant 0 : index
    %c0_14 = arith.constant 0 : index
    %c0_15 = arith.constant 0 : index
    %21 = vector.load %arg7[%c0_13, %c0_14, %c0_15] : memref<12x8x32xf32, #tpu.memory_space<vmem>>, vector<1x8x32xf32>
    %22 = vector.shape_cast %21 : vector<1x8x32xf32> to vector<8x32xf32>
    %23 = vector.shape_cast %20 : vector<8x32xf32> to vector<1x8x32xf32>
    tpu.vector_store %arg7[%c0_13, %c0_14, %c0_15], %23 {strides = array<i32>} : memref<12x8x32xf32, #tpu.memory_space<vmem>>, vector<1x8x32xf32>,
    %24 = vector.extract_strided_slice %8 {offsets = [8, 0], sizes = [8, 32], strides = [1, 1]} : vector<96x32xf32> to vector<8x32xf32>
    %cst_16 = arith.constant dense<0.000000e+00> : vector<8x32xf32>
    %25 = tpu.matmul %20, %9, %cst_16 {dimension_numbers = #tpu.dot_dimension_numbers<[1], [0], [0], [1], [0, 0, 1, 1], [], []>} : vector<8x32xf32>, vector<32x32xf32>, vector<8x32xf32> -> vector<8x32xf32>
    %26 = arith.addf %24, %25 : vector<8x32xf32>
    %27 = math.tanh %26 : vector<8x32xf32>
    %28 = arith.subf %27, %20 : vector<8x32xf32>
    %29 = arith.mulf %12, %28 : vector<8x32xf32>
    %30 = arith.addf %20, %29 : vector<8x32xf32>
    %c1 = arith.constant 1 : index
    %c0_17 = arith.constant 0 : index
    %c0_18 = arith.constant 0 : index
    %31 = vector.load %arg7[%c1, %c0_17, %c0_18] : memref<12x8x32xf32, #tpu.memory_space<vmem>>, vector<1x8x32xf32>
    %32 = vector.shape_cast %31 : vector<1x8x32xf32> to vector<8x32xf32>
    %33 = vector.shape_cast %30 : vector<8x32xf32> to vector<1x8x32xf32>
    tpu.vector_store %arg7[%c1, %c0_17, %c0_18], %33 {strides = array<i32>} : memref<12x8x32xf32, #tpu.memory_space<vmem>>, vector<1x8x32xf32>,
    %34 = vector.extract_strided_slice %8 {offsets = [16, 0], sizes = [8, 32], strides = [1, 1]} : vector<96x32xf32> to vector<8x32xf32>
    %cst_19 = arith.constant dense<0.000000e+00> : vector<8x32xf32>
    %35 = tpu.matmul %30, %9, %cst_19 {dimension_numbers = #tpu.dot_dimension_numbers<[1], [0], [0], [1], [0, 0, 1, 1], [], []>} : vector<8x32xf32>, vector<32x32xf32>, vector<8x32xf32> -> vector<8x32xf32>
    %36 = arith.addf %34, %35 : vector<8x32xf32>
    %37 = math.tanh %36 : vector<8x32xf32>
    %38 = arith.subf %37, %30 : vector<8x32xf32>
    %39 = arith.mulf %12, %38 : vector<8x32xf32>
    %40 = arith.addf %30, %39 : vector<8x32xf32>
    %c2 = arith.constant 2 : index
    %c0_20 = arith.constant 0 : index
    %c0_21 = arith.constant 0 : index
    %41 = vector.load %arg7[%c2, %c0_20, %c0_21] : memref<12x8x32xf32, #tpu.memory_space<vmem>>, vector<1x8x32xf32>
    %42 = vector.shape_cast %41 : vector<1x8x32xf32> to vector<8x32xf32>
    %43 = vector.shape_cast %40 : vector<8x32xf32> to vector<1x8x32xf32>
    tpu.vector_store %arg7[%c2, %c0_20, %c0_21], %43 {strides = array<i32>} : memref<12x8x32xf32, #tpu.memory_space<vmem>>, vector<1x8x32xf32>,
    %44 = vector.extract_strided_slice %8 {offsets = [24, 0], sizes = [8, 32], strides = [1, 1]} : vector<96x32xf32> to vector<8x32xf32>
    %cst_22 = arith.constant dense<0.000000e+00> : vector<8x32xf32>
    %45 = tpu.matmul %40, %9, %cst_22 {dimension_numbers = #tpu.dot_dimension_numbers<[1], [0], [0], [1], [0, 0, 1, 1], [], []>} : vector<8x32xf32>, vector<32x32xf32>, vector<8x32xf32> -> vector<8x32xf32>
    %46 = arith.addf %44, %45 : vector<8x32xf32>
    %47 = math.tanh %46 : vector<8x32xf32>
    %48 = arith.subf %47, %40 : vector<8x32xf32>
    %49 = arith.mulf %12, %48 : vector<8x32xf32>
    %50 = arith.addf %40, %49 : vector<8x32xf32>
    %c3 = arith.constant 3 : index
    %c0_23 = arith.constant 0 : index
    %c0_24 = arith.constant 0 : index
    %51 = vector.load %arg7[%c3, %c0_23, %c0_24] : memref<12x8x32xf32, #tpu.memory_space<vmem>>, vector<1x8x32xf32>
    %52 = vector.shape_cast %51 : vector<1x8x32xf32> to vector<8x32xf32>
    %53 = vector.shape_cast %50 : vector<8x32xf32> to vector<1x8x32xf32>
    tpu.vector_store %arg7[%c3, %c0_23, %c0_24], %53 {strides = array<i32>} : memref<12x8x32xf32, #tpu.memory_space<vmem>>, vector<1x8x32xf32>,
    %54 = vector.extract_strided_slice %8 {offsets = [32, 0], sizes = [8, 32], strides = [1, 1]} : vector<96x32xf32> to vector<8x32xf32>
    %cst_25 = arith.constant dense<0.000000e+00> : vector<8x32xf32>
    %55 = tpu.matmul %50, %9, %cst_25 {dimension_numbers = #tpu.dot_dimension_numbers<[1], [0], [0], [1], [0, 0, 1, 1], [], []>} : vector<8x32xf32>, vector<32x32xf32>, vector<8x32xf32> -> vector<8x32xf32>
    %56 = arith.addf %54, %55 : vector<8x32xf32>
    %57 = math.tanh %56 : vector<8x32xf32>
    %58 = arith.subf %57, %50 : vector<8x32xf32>
    %59 = arith.mulf %12, %58 : vector<8x32xf32>
    %60 = arith.addf %50, %59 : vector<8x32xf32>
    %c4 = arith.constant 4 : index
    %c0_26 = arith.constant 0 : index
    %c0_27 = arith.constant 0 : index
    %61 = vector.load %arg7[%c4, %c0_26, %c0_27] : memref<12x8x32xf32, #tpu.memory_space<vmem>>, vector<1x8x32xf32>
    %62 = vector.shape_cast %61 : vector<1x8x32xf32> to vector<8x32xf32>
    %63 = vector.shape_cast %60 : vector<8x32xf32> to vector<1x8x32xf32>
    tpu.vector_store %arg7[%c4, %c0_26, %c0_27], %63 {strides = array<i32>} : memref<12x8x32xf32, #tpu.memory_space<vmem>>, vector<1x8x32xf32>,
    %64 = vector.extract_strided_slice %8 {offsets = [40, 0], sizes = [8, 32], strides = [1, 1]} : vector<96x32xf32> to vector<8x32xf32>
    %cst_28 = arith.constant dense<0.000000e+00> : vector<8x32xf32>
    %65 = tpu.matmul %60, %9, %cst_28 {dimension_numbers = #tpu.dot_dimension_numbers<[1], [0], [0], [1], [0, 0, 1, 1], [], []>} : vector<8x32xf32>, vector<32x32xf32>, vector<8x32xf32> -> vector<8x32xf32>
    %66 = arith.addf %64, %65 : vector<8x32xf32>
    %67 = math.tanh %66 : vector<8x32xf32>
    %68 = arith.subf %67, %60 : vector<8x32xf32>
    %69 = arith.mulf %12, %68 : vector<8x32xf32>
    %70 = arith.addf %60, %69 : vector<8x32xf32>
    %c5 = arith.constant 5 : index
    %c0_29 = arith.constant 0 : index
    %c0_30 = arith.constant 0 : index
    %71 = vector.load %arg7[%c5, %c0_29, %c0_30] : memref<12x8x32xf32, #tpu.memory_space<vmem>>, vector<1x8x32xf32>
    %72 = vector.shape_cast %71 : vector<1x8x32xf32> to vector<8x32xf32>
    %73 = vector.shape_cast %70 : vector<8x32xf32> to vector<1x8x32xf32>
    tpu.vector_store %arg7[%c5, %c0_29, %c0_30], %73 {strides = array<i32>} : memref<12x8x32xf32, #tpu.memory_space<vmem>>, vector<1x8x32xf32>,
    %74 = vector.extract_strided_slice %8 {offsets = [48, 0], sizes = [8, 32], strides = [1, 1]} : vector<96x32xf32> to vector<8x32xf32>
    %cst_31 = arith.constant dense<0.000000e+00> : vector<8x32xf32>
    %75 = tpu.matmul %70, %9, %cst_31 {dimension_numbers = #tpu.dot_dimension_numbers<[1], [0], [0], [1], [0, 0, 1, 1], [], []>} : vector<8x32xf32>, vector<32x32xf32>, vector<8x32xf32> -> vector<8x32xf32>
    %76 = arith.addf %74, %75 : vector<8x32xf32>
    %77 = math.tanh %76 : vector<8x32xf32>
    %78 = arith.subf %77, %70 : vector<8x32xf32>
    %79 = arith.mulf %12, %78 : vector<8x32xf32>
    %80 = arith.addf %70, %79 : vector<8x32xf32>
    %c6 = arith.constant 6 : index
    %c0_32 = arith.constant 0 : index
    %c0_33 = arith.constant 0 : index
    %81 = vector.load %arg7[%c6, %c0_32, %c0_33] : memref<12x8x32xf32, #tpu.memory_space<vmem>>, vector<1x8x32xf32>
    %82 = vector.shape_cast %81 : vector<1x8x32xf32> to vector<8x32xf32>
    %83 = vector.shape_cast %80 : vector<8x32xf32> to vector<1x8x32xf32>
    tpu.vector_store %arg7[%c6, %c0_32, %c0_33], %83 {strides = array<i32>} : memref<12x8x32xf32, #tpu.memory_space<vmem>>, vector<1x8x32xf32>,
    %84 = vector.extract_strided_slice %8 {offsets = [56, 0], sizes = [8, 32], strides = [1, 1]} : vector<96x32xf32> to vector<8x32xf32>
    %cst_34 = arith.constant dense<0.000000e+00> : vector<8x32xf32>
    %85 = tpu.matmul %80, %9, %cst_34 {dimension_numbers = #tpu.dot_dimension_numbers<[1], [0], [0], [1], [0, 0, 1, 1], [], []>} : vector<8x32xf32>, vector<32x32xf32>, vector<8x32xf32> -> vector<8x32xf32>
    %86 = arith.addf %84, %85 : vector<8x32xf32>
    %87 = math.tanh %86 : vector<8x32xf32>
    %88 = arith.subf %87, %80 : vector<8x32xf32>
    %89 = arith.mulf %12, %88 : vector<8x32xf32>
    %90 = arith.addf %80, %89 : vector<8x32xf32>
    %c7 = arith.constant 7 : index
    %c0_35 = arith.constant 0 : index
    %c0_36 = arith.constant 0 : index
    %91 = vector.load %arg7[%c7, %c0_35, %c0_36] : memref<12x8x32xf32, #tpu.memory_space<vmem>>, vector<1x8x32xf32>
    %92 = vector.shape_cast %91 : vector<1x8x32xf32> to vector<8x32xf32>
    %93 = vector.shape_cast %90 : vector<8x32xf32> to vector<1x8x32xf32>
    tpu.vector_store %arg7[%c7, %c0_35, %c0_36], %93 {strides = array<i32>} : memref<12x8x32xf32, #tpu.memory_space<vmem>>, vector<1x8x32xf32>,
    %94 = vector.extract_strided_slice %8 {offsets = [64, 0], sizes = [8, 32], strides = [1, 1]} : vector<96x32xf32> to vector<8x32xf32>
    %cst_37 = arith.constant dense<0.000000e+00> : vector<8x32xf32>
    %95 = tpu.matmul %90, %9, %cst_37 {dimension_numbers = #tpu.dot_dimension_numbers<[1], [0], [0], [1], [0, 0, 1, 1], [], []>} : vector<8x32xf32>, vector<32x32xf32>, vector<8x32xf32> -> vector<8x32xf32>
    %96 = arith.addf %94, %95 : vector<8x32xf32>
    %97 = math.tanh %96 : vector<8x32xf32>
    %98 = arith.subf %97, %90 : vector<8x32xf32>
    %99 = arith.mulf %12, %98 : vector<8x32xf32>
    %100 = arith.addf %90, %99 : vector<8x32xf32>
    %c8 = arith.constant 8 : index
    %c0_38 = arith.constant 0 : index
    %c0_39 = arith.constant 0 : index
    %101 = vector.load %arg7[%c8, %c0_38, %c0_39] : memref<12x8x32xf32, #tpu.memory_space<vmem>>, vector<1x8x32xf32>
    %102 = vector.shape_cast %101 : vector<1x8x32xf32> to vector<8x32xf32>
    %103 = vector.shape_cast %100 : vector<8x32xf32> to vector<1x8x32xf32>
    tpu.vector_store %arg7[%c8, %c0_38, %c0_39], %103 {strides = array<i32>} : memref<12x8x32xf32, #tpu.memory_space<vmem>>, vector<1x8x32xf32>,
    %104 = vector.extract_strided_slice %8 {offsets = [72, 0], sizes = [8, 32], strides = [1, 1]} : vector<96x32xf32> to vector<8x32xf32>
    %cst_40 = arith.constant dense<0.000000e+00> : vector<8x32xf32>
    %105 = tpu.matmul %100, %9, %cst_40 {dimension_numbers = #tpu.dot_dimension_numbers<[1], [0], [0], [1], [0, 0, 1, 1], [], []>} : vector<8x32xf32>, vector<32x32xf32>, vector<8x32xf32> -> vector<8x32xf32>
    %106 = arith.addf %104, %105 : vector<8x32xf32>
    %107 = math.tanh %106 : vector<8x32xf32>
    %108 = arith.subf %107, %100 : vector<8x32xf32>
    %109 = arith.mulf %12, %108 : vector<8x32xf32>
    %110 = arith.addf %100, %109 : vector<8x32xf32>
    %c9 = arith.constant 9 : index
    %c0_41 = arith.constant 0 : index
    %c0_42 = arith.constant 0 : index
    %111 = vector.load %arg7[%c9, %c0_41, %c0_42] : memref<12x8x32xf32, #tpu.memory_space<vmem>>, vector<1x8x32xf32>
    %112 = vector.shape_cast %111 : vector<1x8x32xf32> to vector<8x32xf32>
    %113 = vector.shape_cast %110 : vector<8x32xf32> to vector<1x8x32xf32>
    tpu.vector_store %arg7[%c9, %c0_41, %c0_42], %113 {strides = array<i32>} : memref<12x8x32xf32, #tpu.memory_space<vmem>>, vector<1x8x32xf32>,
    %114 = vector.extract_strided_slice %8 {offsets = [80, 0], sizes = [8, 32], strides = [1, 1]} : vector<96x32xf32> to vector<8x32xf32>
    %cst_43 = arith.constant dense<0.000000e+00> : vector<8x32xf32>
    %115 = tpu.matmul %110, %9, %cst_43 {dimension_numbers = #tpu.dot_dimension_numbers<[1], [0], [0], [1], [0, 0, 1, 1], [], []>} : vector<8x32xf32>, vector<32x32xf32>, vector<8x32xf32> -> vector<8x32xf32>
    %116 = arith.addf %114, %115 : vector<8x32xf32>
    %117 = math.tanh %116 : vector<8x32xf32>
    %118 = arith.subf %117, %110 : vector<8x32xf32>
    %119 = arith.mulf %12, %118 : vector<8x32xf32>
    %120 = arith.addf %110, %119 : vector<8x32xf32>
    %c10 = arith.constant 10 : index
    %c0_44 = arith.constant 0 : index
    %c0_45 = arith.constant 0 : index
    %121 = vector.load %arg7[%c10, %c0_44, %c0_45] : memref<12x8x32xf32, #tpu.memory_space<vmem>>, vector<1x8x32xf32>
    %122 = vector.shape_cast %121 : vector<1x8x32xf32> to vector<8x32xf32>
    %123 = vector.shape_cast %120 : vector<8x32xf32> to vector<1x8x32xf32>
    tpu.vector_store %arg7[%c10, %c0_44, %c0_45], %123 {strides = array<i32>} : memref<12x8x32xf32, #tpu.memory_space<vmem>>, vector<1x8x32xf32>,
    %124 = vector.extract_strided_slice %8 {offsets = [88, 0], sizes = [8, 32], strides = [1, 1]} : vector<96x32xf32> to vector<8x32xf32>
    %cst_46 = arith.constant dense<0.000000e+00> : vector<8x32xf32>
    %125 = tpu.matmul %120, %9, %cst_46 {dimension_numbers = #tpu.dot_dimension_numbers<[1], [0], [0], [1], [0, 0, 1, 1], [], []>} : vector<8x32xf32>, vector<32x32xf32>, vector<8x32xf32> -> vector<8x32xf32>
    %126 = arith.addf %124, %125 : vector<8x32xf32>
    %127 = math.tanh %126 : vector<8x32xf32>
    %128 = arith.subf %127, %120 : vector<8x32xf32>
    %129 = arith.mulf %12, %128 : vector<8x32xf32>
    %130 = arith.addf %120, %129 : vector<8x32xf32>
    %c11 = arith.constant 11 : index
    %c0_47 = arith.constant 0 : index
    %c0_48 = arith.constant 0 : index
    %131 = vector.load %arg7[%c11, %c0_47, %c0_48] : memref<12x8x32xf32, #tpu.memory_space<vmem>>, vector<1x8x32xf32>
    %132 = vector.shape_cast %131 : vector<1x8x32xf32> to vector<8x32xf32>
    %133 = vector.shape_cast %130 : vector<8x32xf32> to vector<1x8x32xf32>
    tpu.vector_store %arg7[%c11, %c0_47, %c0_48], %133 {strides = array<i32>} : memref<12x8x32xf32, #tpu.memory_space<vmem>>, vector<1x8x32xf32>,
    %c0_49 = arith.constant 0 : index
    %c0_50 = arith.constant 0 : index
    %134 = vector.load %arg8[%c0_49, %c0_50] : memref<8x32xf32, #tpu.memory_space<vmem>>, vector<8x32xf32>
    tpu.vector_store %arg8[%c0_49, %c0_50], %130 {strides = array<i32>} : memref<8x32xf32, #tpu.memory_space<vmem>>, vector<8x32xf32>,
    return
  }
  func.func @transform_0(%arg0: i32) -> (i32, i32) {
    %c0_i32 = arith.constant 0 : i32
    %c0_i32_0 = arith.constant 0 : i32
    return %arg0, %c0_i32 : i32, i32
  }
  func.func @transform_1(%arg0: i32) -> (i32, i32) {
    %c0_i32 = arith.constant 0 : i32
    %c0_i32_0 = arith.constant 0 : i32
    %c0_i32_1 = arith.constant 0 : i32
    return %c0_i32, %c0_i32_0 : i32, i32
  }
  func.func @transform_2(%arg0: i32) -> (i32, i32) {
    %c0_i32 = arith.constant 0 : i32
    %c0_i32_0 = arith.constant 0 : i32
    %c0_i32_1 = arith.constant 0 : i32
    return %c0_i32, %c0_i32_0 : i32, i32
  }
  func.func @transform_3(%arg0: i32) -> (i32, i32) {
    %c0_i32 = arith.constant 0 : i32
    %c0_i32_0 = arith.constant 0 : i32
    %c0_i32_1 = arith.constant 0 : i32
    return %c0_i32, %c0_i32_0 : i32, i32
  }
  func.func @transform_4(%arg0: i32) -> (i32, i32) {
    %c0_i32 = arith.constant 0 : i32
    %c0_i32_0 = arith.constant 0 : i32
    %c0_i32_1 = arith.constant 0 : i32
    return %c0_i32, %c0_i32_0 : i32, i32
  }
  func.func @transform_5(%arg0: i32) -> (i32, i32) {
    %c0_i32 = arith.constant 0 : i32
    %c0_i32_0 = arith.constant 0 : i32
    %c0_i32_1 = arith.constant 0 : i32
    return %c0_i32, %c0_i32_0 : i32, i32
  }
  func.func @transform_6(%arg0: i32) -> (i32, i32, i32) {
    %c0_i32 = arith.constant 0 : i32
    %c0_i32_0 = arith.constant 0 : i32
    %c0_i32_1 = arith.constant 0 : i32
    return %arg0, %c0_i32, %c0_i32_0 : i32, i32, i32
  }
}

</mosaic_0001>

<bundles_post_ra>
// kernel: ltc_sequence_forward.1
= control target key start
LH: loop header
LB: loop body
LE: loop exit
PB: predicated region body
PF: predicated region fallthrough
CT: control target
= control target key end

     0   :  { %11 = vsyncpa [#allocation4], 0  ;;  %s2028_s0 = inlined_call_operand.hbm [shape: f32[96,16], index: 0, kind: input, shape index: {}]   ;;  %s2029_s1 = inlined_call_operand.hbm [shape: f32[8,32], index: 1, kind: input, shape index: {}]   ;;  %s2030_s2 = inlined_call_operand.hbm [shape: f32[16,32], index: 2, kind: input, shape index: {}]   ;;  %s2031_s3 = inlined_call_operand.hbm [shape: f32[32,32], index: 3, kind: input, shape index: {}]   ;;  %s2032_s4 = inlined_call_operand.vmem [shape: f32[1,32], index: 4, kind: input, shape index: {}]   ;;  %s2033_s5 = inlined_call_operand.vmem [shape: f32[1,32], index: 5, kind: input, shape index: {}]   ;;  %s2034_s6 = inlined_call_operand.vmem [shape: f32[12,8,32], index: 6, kind: output, shape index: {}]  }
   0x1   :  { %12 = vsyncpa [#allocation6], 0 }
   0x2   :  { %13 = vsyncpa [#allocation9], 0  ;;  %s1714_s21 = smov [#allocation5]   ;;  %s1715_s23 = smov [#allocation3]  }
   0x3   :  { %s32_s22 = sshll.u32 %s1714_s21, 4  ;;  %s19_s24 = sshll.u32 %s1715_s23, 4  ;;  %s33_s22 = int_to_ptr.vmem [resolvable:$true] %s32_s22  ;;  %s1758_s24 = int_to_ptr.vmem [resolvable:$true] %s19_s24 }
   0x4   :  { %s1620_s27 = scalar_lea.hbm %s2029_s1, 128 }
   0x5   :  { %p1621_p0 = scmp.ne.s32.totalorder %s2029_s1, %s1620_s27  ;;  %p1624_p1 = scmp.lt.u32.totalorder %s1620_s27, %s2029_s1 }
   0x7   :  { %p1626_p2 = pnand %p1624_p1, %p1621_p0 }
   0x9   :  { %1629 = shalt.err (!%p1626_p2)
}
   0xa   :  { %s1630_s8 = scalar_lea.vmem %s33_s22, 128  ;;  %p1635_p4 = scmp.lt.s32.totalorder %s33_s22, %s33_s22 }
   0xb   :  { %p1631_p3 = scmp.ne.s32.totalorder %s33_s22, %s1630_s8  ;;  %p1636_p5 = scmp.lt.s32.totalorder %s1630_s8, %s1630_s8 }
   0xd   :  { %p1637_p6 = por %p1636_p5, %p1635_p4 }
   0xf   :  { %p1638_p7 = pnand %p1637_p6, %p1631_p3 }
  0x11   :  { %1641 = shalt.err (!%p1638_p7)
}
  0x12   :  { %35 = dma.hbm_to_vmem [thread:$0]  %s2029_s1, 128, %s33_s22, [#allocation6]  }
  0x13   :  { %s1642_s13 = scalar_lea.hbm %s2028_s0, 1536 }
  0x14   :  { %p1643_p8 = scmp.ne.s32.totalorder %s2028_s0, %s1642_s13  ;;  %p1646_p9 = scmp.lt.u32.totalorder %s1642_s13, %s2028_s0 }
  0x16   :  { %p1648_p10 = pnand %p1646_p9, %p1643_p8 }
  0x18   :  { %1651 = shalt.err (!%p1648_p10)
}
  0x19   :  { %s1652_s18 = scalar_lea.vmem %s1758_s24, 1536  ;;  %p1657_p12 = scmp.lt.s32.totalorder %s1758_s24, %s1758_s24 }
  0x1a   :  { %p1653_p11 = scmp.ne.s32.totalorder %s1758_s24, %s1652_s18  ;;  %p1658_p13 = scmp.lt.s32.totalorder %s1652_s18, %s1652_s18 }
  0x1c   :  { %p1659_p0 = por %p1658_p13, %p1657_p12 }
  0x1e   :  { %p1660_p1 = pnand %p1659_p0, %p1653_p11 }
  0x20   :  { %1663 = shalt.err (!%p1660_p1)
}
  0x21   :  { %s1716_s1 = smov 128   ;;  %s1717_s19 = smov 8  }
  0x22   :  { %25 = dma.hbm_to_vmem [thread:$0]  %s2028_s0, 1536, %s1758_s24, [#allocation4], %s1716_s1, %s1716_s1, %s1717_s19  }
  0x23   :  { %s1718_s22 = smov [#allocation7]   ;;  %s1719_s25 = smov [#allocation8]  }
  0x24   :  { %s41_s23 = sshll.u32 %s1718_s22, 4  ;;  %s53_s26 = sshll.u32 %s1719_s25, 4  ;;  %s42_s23 = int_to_ptr.vmem [resolvable:$true] %s41_s23  ;;  %s1792_s26 = int_to_ptr.vmem [resolvable:$true] %s53_s26 }
  0x25   :  { %s1664_s29 = scalar_lea.hbm %s2030_s2, 256 }
  0x26   :  { %p1665_p2 = scmp.ne.s32.totalorder %s2030_s2, %s1664_s29  ;;  %p1668_p3 = scmp.lt.u32.totalorder %s1664_s29, %s2030_s2 }
  0x28   :  { %p1670_p4 = pnand %p1668_p3, %p1665_p2 }
  0x2a   :  { %1673 = shalt.err (!%p1670_p4)
}
  0x2b   :  { %s1674_s0 = scalar_lea.vmem %s42_s23, 256  ;;  %p1679_p6 = scmp.lt.s32.totalorder %s42_s23, %s42_s23 }
  0x2c   :  { %p1675_p5 = scmp.ne.s32.totalorder %s42_s23, %s1674_s0  ;;  %p1680_p7 = scmp.lt.s32.totalorder %s1674_s0, %s1674_s0 }
  0x2e   :  { %p1681_p8 = por %p1680_p7, %p1679_p6 }
  0x30   :  { %p1682_p9 = pnand %p1681_p8, %p1675_p5 }
  0x32   :  { %1685 = shalt.err (!%p1682_p9)
}
  0x33   :  { %47 = dma.hbm_to_vmem [thread:$0]  %s2030_s2, 256, %s42_s23, [#allocation6], %s1716_s1, %s1716_s1, %s1717_s19  }
  0x34   :  { %s1686_s13 = scalar_lea.hbm %s2031_s3, 512 }
  0x35   :  { %p1687_p10 = scmp.ne.s32.totalorder %s2031_s3, %s1686_s13  ;;  %p1690_p11 = scmp.lt.u32.totalorder %s1686_s13, %s2031_s3 }
  0x37   :  { %p1692_p12 = pnand %p1690_p11, %p1687_p10 }
  0x39   :  { %1695 = shalt.err (!%p1692_p12)
}
  0x3a   :  { %s1696_s18 = scalar_lea.vmem %s1792_s26, 512  ;;  %p1701_p0 = scmp.lt.s32.totalorder %s1792_s26, %s1792_s26 }
  0x3b   :  { %p1697_p13 = scmp.ne.s32.totalorder %s1792_s26, %s1696_s18  ;;  %p1702_p1 = scmp.lt.s32.totalorder %s1696_s18, %s1696_s18 }
  0x3d   :  { %p1703_p2 = por %p1702_p1, %p1701_p0 }
  0x3f   :  { %p1704_p3 = pnand %p1703_p2, %p1697_p13 }
  0x41   :  { %1707 = shalt.err (!%p1704_p3)
}
  0x42   :  { %59 = dma.hbm_to_vmem [thread:$0]  %s2031_s3, 512, %s1792_s26, [#allocation9], %s1716_s1, %s1716_s1, %s1717_s19  }
  0x43   :  { %1708 = dma.done.wait [#allocation4], 1536  }
  0x44   :  { %1709 = vsyncadd [#allocation4], 4294965760 }
  0x45   :  { %1710 = dma.done.wait [#allocation6], 384  }
  0x46   :  { %1711 = vsyncadd [#allocation6], 4294966912 }
  0x47   :  { %1712 = dma.done.wait [#allocation9], 512  }
  0x48   :  { %1713 = vsyncadd [#allocation9], 4294966784  ;;  %v1720_v0 = vmov 0.0|0.0   ;;  %vm1721_vm0 = vmmov 0   ;;  %v1722_v1 = vmov 0.0   ;;  %vm104_vm1 = vcmask 130048  }
  0x49   :  { %1515 = vmatprep.subr.bf16.mxu1 %v1720_v0  ;;  %1387 = vmatprep.mubr.msk.f32.mxu1 %vm1721_vm0, %v1722_v1  ;;  %v95_v2 = vld [vmem:[#allocation7] sm:$0xff]  ;;  %v96_v3 = vld [vmem:[#allocation7 + $0x8] sm:$0xff]  ;;  %v266_v4 = vld [vmem:[#allocation8] sm:$0xff]  ;;  %vm81_vm2 = vcmask 261120  }
  0x4a   :  { %v1511_v5 = vpack.c.bf16 %v96_v3, %v95_v2  ;;  %v267_v6 = vld [vmem:[#allocation8 + $0x8] sm:$0xff]  ;;  %v268_v9 = vld [vmem:[#allocation8 + $0x10] sm:$0xff]  ;;  %v269_v10 = vld [vmem:[#allocation8 + $0x18] sm:$0xff] }
  0x4b   :  { %v83_v7 = vld [vmem:[#allocation3] sm:$0xff]  ;;  %v1832_v8 = vpack.c.bf16 %v267_v6, %v266_v4  ;;  %v84_v12 = vld [vmem:[#allocation3 + $0x8] sm:$0xff]  ;;  %v1837_v13 = vpack.c.bf16 %v269_v10, %v268_v9  ;;  %v1858_v15 = vld [vmem:[%s2032_s4] ss:$0 sm:$0xff] }
  0x4c   :  { %1361 = vmatprep.mubr.msk.f32.mxu0 %vm104_vm1, %v83_v7  ;;  %v80_v11 = vld [vmem:[#allocation5] sm:$0xff]  ;;  %1512 = vmatprep.subr.bf16.mxu0 %v1511_v5  ;;  %v1864_v23 = vld [vmem:[%s2033_s5] ss:$0 sm:$0xff]  ;;  %v85_v27 = vld [vmem:[#allocation3 + $0x10] sm:$0xff] }
  0x4d   :  { %82 = vst.msk [vmem:[#allocation2] sm:$0xff] %vm81_vm2, %v80_v11  ;;  %1517 = vmatpush3.bf16.msra.mxu1 %v1832_v8  ;;  %1514 = vmatpush3.bf16.msra.mxu0 %v1511_v5  ;;  %v86_v28 = vld [vmem:[#allocation3 + $0x18] sm:$0xff]  ;;  %v87_v39 = vld [vmem:[#allocation3 + $0x20] sm:$0xff]  ;;  %v88_v40 = vld [vmem:[#allocation3 + $0x28] sm:$0xff] }
  0x4e   :  { %1518 = vmatprep.subr.bf16.mxu1 %v1720_v0  ;;  %1533 = vmatprep.subr.bf16.mxu0 %v1720_v0  ;;  %v89_v41 = vld [vmem:[#allocation3 + $0x30] sm:$0xff]  ;;  %v90_v42 = vld [vmem:[#allocation3 + $0x38] sm:$0xff]  ;;  %v91_v43 = vld [vmem:[#allocation3 + $0x40] sm:$0xff] }
  0x4f   :  { %v92_v44 = vld [vmem:[#allocation3 + $0x48] sm:$0xff]  ;;  %v93_v45 = vld [vmem:[#allocation3 + $0x50] sm:$0xff]  ;;  %v94_v46 = vld [vmem:[#allocation3 + $0x58] sm:$0xff] }
  0x50   :  { %1362 = vmatmul.mubr.msk.f32.vlgmr.msra.gmra.mrb[0].mxu0 %vm104_vm1, %v84_v12 }
  0x51   :  { %1520 = vmatpush3.bf16.msra.mxu1 %v1837_v13  ;;  %1535 = vmatpush3.bf16.msra.mxu0 %v1832_v8 }
  0x52   :  { %1521 = vmatprep.subr.bf16.mxu1 %v1720_v0  ;;  %1536 = vmatprep.subr.bf16.mxu0 %v1720_v0 }
  0x53   :  { %1364 = vmatprep.mubr.msk.f32.mxu0 %vm104_vm1, %v85_v27 }
  0x54   :  { %v277_v14 = vld [vmem:[#allocation2] sm:$0xff]  ;;  %1365 = vmatmul.mubr.msk.f32.gmra.mrb[2].mxu0 %vm104_vm1, %v86_v28 }
  0x55   :  { %1388 = vmatmul.mubr.msk.f32.vlgmr.msra.gmra.mrb[0].mxu1 %vm81_vm2, %v277_v14  ;;  %1538 = vmatpush3.bf16.msra.mxu0 %v1837_v13 }
  0x56   :  { %1523 = vmatpush3.bf16.msra.mxu1 %v1832_v8  ;;  %1398 = vmatprep.mubr.msk.f32.mxu1 %vm1721_vm0, %v1722_v1 }
  0x57   :  { %1524 = vmatprep.subr.bf16.mxu1 %v1720_v0  ;;  %1545 = vmatprep.subr.bf16.mxu0 %v1720_v0 }
  0x58   :  { %1367 = vmatprep.mubr.msk.f32.mxu0 %vm104_vm1, %v87_v39 }
  0x59   :  { %1368 = vmatmul.mubr.msk.f32.gmra.mrb[4].mxu0 %vm104_vm1, %v88_v40 }
  0x5a   :  { %1526 = vmatpush3.bf16.msra.mxu1 %v1837_v13  ;;  %1370 = vmatprep.mubr.msk.f32.mxu0 %vm104_vm1, %v89_v41 }
  0x5b   :  { %1527 = vmatprep.subr.bf16.mxu1 %v1720_v0 }
  0x5d   :  { %1371 = vmatmul.mubr.msk.f32.gmra.mrb[6].mxu0 %vm104_vm1, %v90_v42 }
  0x5e   :  { %1373 = vmatprep.mubr.msk.f32.mxu0 %vm104_vm1, %v91_v43 }
  0x61   :  { %1374 = vmatmul.mubr.msk.f32.gmra.mrb[8].mxu0 %vm104_vm1, %v92_v44 }
  0x62   :  { %1376 = vmatprep.mubr.msk.f32.mxu0 %vm104_vm1, %v93_v45 }
  0x65   :  { %1377 = vmatmul.mubr.msk.f32.gmra.mrb[10].mxu0 %vm104_vm1, %v94_v46 }
  0x66   :  { %1420 = vmatprep.mubr.msk.f32.mxu0 %vm1721_vm0, %v1722_v1 }
 0x123   :  { %v1363_v16 = vpop.f32.mrb[0].mxu0 }
 0x124   :  { %v207_v17 = vpop.f32.mrb[1].mxu0  ;;  %v213_v29 = vadd.f32 %v1363_v16, %v1858_v15 }
 0x125   :  { %v208_v18 = vadd.f32 %v1858_v15, %v207_v17 }
 0x127   :  { %v1366_v37 = vpop.f32.mrb[2].mxu0 }
 0x128   :  { %v348_v19 = vpop.f32.mrb[0].mxu1  ;;  %v217_v38 = vpop.f32.mrb[3].mxu0  ;;  %v223_v63 = vadd.f32 %v1366_v37, %v1858_v15 }
 0x129   :  { %v352_v20 = vadd.f32 %v348_v19, %v208_v18  ;;  %v1389_v21 = vpop.f32.mrb[1].mxu1  ;;  %v218_v47 = vadd.f32 %v1858_v15, %v217_v38 }
 0x12b   :  { %1596 = vtanh.f32 %v352_v20 }
 0x12c   :  { %v1369_v55 = vpop.f32.mrb[4].mxu0 }
 0x12d   :  { %v227_v56 = vpop.f32.mrb[5].mxu0  ;;  %v233_v20 = vadd.f32 %v1369_v55, %v1858_v15 }
 0x12e   :  { %v228_v10 = vadd.f32 %v1858_v15, %v227_v56 }
 0x130   :  { %v1916_v57 = vpop.f32.mrb[6].mxu0 }
 0x131   :  { %v237_v58 = vpop.f32.mrb[7].mxu0  ;;  %v243_v37 = vadd.f32 %v1916_v57, %v1858_v15 }
 0x134   :  { %v1918_v59 = vpop.f32.mrb[8].mxu0 }
 0x135   :  { %v1597_v22 = vpop.eup %1596  ;;  %v1920_v60 = vpop.f32.mrb[9].mxu0 }
 0x136   :  { %v354_v24 = vsub.f32 %v1597_v22, %v277_v14  ;;  %v248_v45 = vadd.f32 %v1858_v15, %v1920_v60 }
 0x138   :  { %v355_v25 = vmul.f32 %v1864_v23, %v354_v24  ;;  %v1922_v61 = vpop.f32.mrb[10].mxu0 }
 0x139   :  { %v1924_v62 = vpop.f32.mrb[11].mxu0 }
 0x13a   :  { %v356_v26 = vadd.f32 %v355_v25, %v277_v14 }
 0x13c   :  { %357 = vst.msk [vmem:[%s2034_s6] sm:$0xff] %vm81_vm2, %v356_v26  ;;  %1399 = vmatmul.mubr.msk.f32.vlgmr.msra.gmra.mrb[2].mxu1 %vm81_vm2, %v356_v26 }
 0x13d   :  { %1529 = vmatpush3.bf16.msra.mxu1 %v1832_v8  ;;  %1409 = vmatprep.mubr.msk.f32.mxu1 %vm1721_vm0, %v1722_v1 }
 0x13e   :  { %1530 = vmatprep.subr.bf16.mxu1 %v1720_v0 }
 0x141   :  { %1532 = vmatpush3.bf16.msra.mxu1 %v1837_v13 }
 0x142   :  { %1539 = vmatprep.subr.bf16.mxu1 %v1720_v0 }
 0x20f   :  { %v427_v30 = vpop.f32.mrb[2].mxu1 }
 0x210   :  { %v431_v31 = vadd.f32 %v427_v30, %v213_v29  ;;  %v1400_v32 = vpop.f32.mrb[3].mxu1  ;;  %v238_v29 = vadd.f32 %v1858_v15, %v237_v58 }
 0x212   :  { %1598 = vtanh.f32 %v431_v31 }
 0x21c   :  { %v1599_v33 = vpop.eup %1598 }
 0x21d   :  { %v433_v34 = vsub.f32 %v1599_v33, %v356_v26 }
 0x21f   :  { %v434_v35 = vmul.f32 %v1864_v23, %v433_v34 }
 0x221   :  { %v435_v36 = vadd.f32 %v434_v35, %v356_v26 }
 0x223   :  { %1262 = vst.msk [vmem:[%s2034_s6 + $0x8] sm:$0xff] %vm81_vm2, %v435_v36  ;;  %1410 = vmatmul.mubr.msk.f32.vlgmr.msra.gmra.mrb[4].mxu1 %vm81_vm2, %v435_v36 }
 0x224   :  { %1541 = vmatpush3.bf16.msra.mxu1 %v1832_v8  ;;  %1431 = vmatprep.mubr.msk.f32.mxu1 %vm1721_vm0, %v1722_v1 }
 0x225   :  { %1542 = vmatprep.subr.bf16.mxu1 %v1720_v0 }
 0x228   :  { %1544 = vmatpush3.bf16.msra.mxu1 %v1837_v13 }
 0x229   :  { %1551 = vmatprep.subr.bf16.mxu1 %v1720_v0 }
 0x2f6   :  { %v507_v48 = vpop.f32.mrb[4].mxu1 }
 0x2f7   :  { %v511_v49 = vadd.f32 %v507_v48, %v218_v47  ;;  %v1411_v50 = vpop.f32.mrb[5].mxu1 }
 0x2f9   :  { %1600 = vtanh.f32 %v511_v49 }
 0x303   :  { %v1601_v51 = vpop.eup %1600 }
 0x304   :  { %v513_v52 = vsub.f32 %v1601_v51, %v435_v36 }
 0x306   :  { %v514_v53 = vmul.f32 %v1864_v23, %v513_v52 }
 0x308   :  { %v515_v54 = vadd.f32 %v514_v53, %v435_v36  ;;  %v253_v53 = vadd.f32 %v1918_v59, %v1858_v15 }
 0x30a   :  { %1264 = vst.msk [vmem:[%s2034_s6 + $0x10] sm:$0xff] %vm81_vm2, %v515_v54  ;;  %1421 = vmatmul.mubr.msk.f32.vlgmr.msra.gmra.mrb[12].mxu0 %vm81_vm2, %v515_v54 }
 0x30b   :  { %1547 = vmatpush3.bf16.msra.mxu0 %v1832_v8  ;;  %1442 = vmatprep.mubr.msk.f32.mxu0 %vm1721_vm0, %v1722_v1 }
 0x30c   :  { %1548 = vmatprep.subr.bf16.mxu0 %v1720_v0 }
 0x30f   :  { %1550 = vmatpush3.bf16.msra.mxu0 %v1837_v13 }
 0x310   :  { %1557 = vmatprep.subr.bf16.mxu0 %v1720_v0 }
 0x3dd   :  { %v587_v2 = vpop.f32.mrb[12].mxu0 }
 0x3de   :  { %v591_v3 = vadd.f32 %v587_v2, %v223_v63  ;;  %v1422_v4 = vpop.f32.mrb[13].mxu0 }
 0x3e0   :  { %1602 = vtanh.f32 %v591_v3 }
 0x3ea   :  { %v1603_v5 = vpop.eup %1602 }
 0x3eb   :  { %v593_v6 = vsub.f32 %v1603_v5, %v515_v54  ;;  %v263_v5 = vadd.f32 %v1922_v61, %v1858_v15 }
 0x3ed   :  { %v594_v7 = vmul.f32 %v1864_v23, %v593_v6 }
 0x3ef   :  { %v595_v9 = vadd.f32 %v594_v7, %v515_v54 }
 0x3f1   :  { %1266 = vst.msk [vmem:[%s2034_s6 + $0x18] sm:$0xff] %vm81_vm2, %v595_v9  ;;  %1432 = vmatmul.mubr.msk.f32.vlgmr.msra.gmra.mrb[6].mxu1 %vm81_vm2, %v595_v9 }
 0x3f2   :  { %1553 = vmatpush3.bf16.msra.mxu1 %v1832_v8  ;;  %1453 = vmatprep.mubr.msk.f32.mxu1 %vm1721_vm0, %v1722_v1 }
 0x3f3   :  { %1554 = vmatprep.subr.bf16.mxu1 %v1720_v0 }
 0x3f6   :  { %1556 = vmatpush3.bf16.msra.mxu1 %v1837_v13 }
 0x3f7   :  { %1563 = vmatprep.subr.bf16.mxu1 %v1720_v0 }
 0x4c4   :  { %v667_v11 = vpop.f32.mrb[6].mxu1 }
 0x4c5   :  { %v671_v12 = vadd.f32 %v667_v11, %v228_v10  ;;  %v1433_v14 = vpop.f32.mrb[7].mxu1 }
 0x4c7   :  { %1604 = vtanh.f32 %v671_v12 }
 0x4d1   :  { %v1605_v16 = vpop.eup %1604 }
 0x4d2   :  { %v673_v17 = vsub.f32 %v1605_v16, %v595_v9 }
 0x4d4   :  { %v674_v18 = vmul.f32 %v1864_v23, %v673_v17 }
 0x4d6   :  { %v675_v19 = vadd.f32 %v674_v18, %v595_v9 }
 0x4d8   :  { %1268 = vst.msk [vmem:[%s2034_s6 + $0x20] sm:$0xff] %vm81_vm2, %v675_v19  ;;  %1443 = vmatmul.mubr.msk.f32.vlgmr.msra.gmra.mrb[14].mxu0 %vm81_vm2, %v675_v19 }
 0x4d9   :  { %1559 = vmatpush3.bf16.msra.mxu0 %v1832_v8  ;;  %1464 = vmatprep.mubr.msk.f32.mxu0 %vm1721_vm0, %v1722_v1 }
 0x4da   :  { %1560 = vmatprep.subr.bf16.mxu0 %v1720_v0 }
 0x4dd   :  { %1562 = vmatpush3.bf16.msra.mxu0 %v1837_v13 }
 0x4de   :  { %1569 = vmatprep.subr.bf16.mxu0 %v1720_v0 }
 0x5ab   :  { %v747_v21 = vpop.f32.mrb[14].mxu0 }
 0x5ac   :  { %v751_v22 = vadd.f32 %v747_v21, %v233_v20  ;;  %v1444_v24 = vpop.f32.mrb[15].mxu0 }
 0x5ae   :  { %1606 = vtanh.f32 %v751_v22 }
 0x5b8   :  { %v1607_v25 = vpop.eup %1606 }
 0x5b9   :  { %v753_v26 = vsub.f32 %v1607_v25, %v675_v19 }
 0x5bb   :  { %v754_v27 = vmul.f32 %v1864_v23, %v753_v26 }
 0x5bd   :  { %v755_v28 = vadd.f32 %v754_v27, %v675_v19 }
 0x5bf   :  { %1270 = vst.msk [vmem:[%s2034_s6 + $0x28] sm:$0xff] %vm81_vm2, %v755_v28  ;;  %1454 = vmatmul.mubr.msk.f32.vlgmr.msra.gmra.mrb[8].mxu1 %vm81_vm2, %v755_v28 }
 0x5c0   :  { %1565 = vmatpush3.bf16.msra.mxu1 %v1832_v8  ;;  %1475 = vmatprep.mubr.msk.f32.mxu1 %vm1721_vm0, %v1722_v1 }
 0x5c1   :  { %1566 = vmatprep.subr.bf16.mxu1 %v1720_v0 }
 0x5c4   :  { %1568 = vmatpush3.bf16.msra.mxu1 %v1837_v13 }
 0x5c5   :  { %1575 = vmatprep.subr.bf16.mxu1 %v1720_v0 }
 0x692   :  { %v827_v30 = vpop.f32.mrb[8].mxu1 }
 0x693   :  { %v831_v31 = vadd.f32 %v827_v30, %v238_v29  ;;  %v1455_v32 = vpop.f32.mrb[9].mxu1 }
 0x695   :  { %1608 = vtanh.f32 %v831_v31 }
 0x69f   :  { %v1609_v33 = vpop.eup %1608 }
 0x6a0   :  { %v833_v34 = vsub.f32 %v1609_v33, %v755_v28 }
 0x6a2   :  { %v834_v35 = vmul.f32 %v1864_v23, %v833_v34 }
 0x6a4   :  { %v835_v36 = vadd.f32 %v834_v35, %v755_v28 }
 0x6a6   :  { %1272 = vst.msk [vmem:[%s2034_s6 + $0x30] sm:$0xff] %vm81_vm2, %v835_v36  ;;  %1465 = vmatmul.mubr.msk.f32.vlgmr.msra.gmra.mrb[16].mxu0 %vm81_vm2, %v835_v36 }
 0x6a7   :  { %1571 = vmatpush3.bf16.msra.mxu0 %v1832_v8  ;;  %1486 = vmatprep.mubr.msk.f32.mxu0 %vm1721_vm0, %v1722_v1 }
 0x6a8   :  { %1572 = vmatprep.subr.bf16.mxu0 %v1720_v0 }
 0x6ab   :  { %1574 = vmatpush3.bf16.msra.mxu0 %v1837_v13 }
 0x6ac   :  { %1581 = vmatprep.subr.bf16.mxu0 %v1720_v0 }
 0x779   :  { %v907_v38 = vpop.f32.mrb[16].mxu0 }
 0x77a   :  { %v911_v39 = vadd.f32 %v907_v38, %v243_v37  ;;  %v1466_v40 = vpop.f32.mrb[17].mxu0 }
 0x77c   :  { %1610 = vtanh.f32 %v911_v39 }
 0x786   :  { %v1611_v41 = vpop.eup %1610 }
 0x787   :  { %v913_v42 = vsub.f32 %v1611_v41, %v835_v36 }
 0x789   :  { %v914_v43 = vmul.f32 %v1864_v23, %v913_v42 }
 0x78b   :  { %v915_v44 = vadd.f32 %v914_v43, %v835_v36 }
 0x78d   :  { %1274 = vst.msk [vmem:[%s2034_s6 + $0x38] sm:$0xff] %vm81_vm2, %v915_v44  ;;  %1476 = vmatmul.mubr.msk.f32.vlgmr.msra.gmra.mrb[10].mxu1 %vm81_vm2, %v915_v44 }
 0x78e   :  { %1577 = vmatpush3.bf16.msra.mxu1 %v1832_v8  ;;  %1497 = vmatprep.mubr.msk.f32.mxu1 %vm1721_vm0, %v1722_v1 }
 0x78f   :  { %1578 = vmatprep.subr.bf16.mxu1 %v1720_v0 }
 0x792   :  { %1580 = vmatpush3.bf16.msra.mxu1 %v1837_v13 }
 0x860   :  { %v987_v46 = vpop.f32.mrb[10].mxu1 }
 0x861   :  { %v991_v47 = vadd.f32 %v987_v46, %v248_v45  ;;  %v1477_v48 = vpop.f32.mrb[11].mxu1 }
 0x863   :  { %1612 = vtanh.f32 %v991_v47 }
 0x86d   :  { %v1613_v49 = vpop.eup %1612 }
 0x86e   :  { %v993_v50 = vsub.f32 %v1613_v49, %v915_v44 }
 0x870   :  { %v994_v51 = vmul.f32 %v1864_v23, %v993_v50 }
 0x872   :  { %v995_v52 = vadd.f32 %v994_v51, %v915_v44 }
 0x874   :  { %1276 = vst.msk [vmem:[%s2034_s6 + $0x40] sm:$0xff] %vm81_vm2, %v995_v52  ;;  %1487 = vmatmul.mubr.msk.f32.vlgmr.msra.gmra.mrb[18].mxu0 %vm81_vm2, %v995_v52 }
 0x875   :  { %1583 = vmatpush3.bf16.msra.mxu0 %v1832_v8  ;;  %1508 = vmatprep.mubr.msk.f32.mxu0 %vm1721_vm0, %v1722_v1 }
 0x876   :  { %1584 = vmatprep.subr.bf16.mxu0 %v1720_v0  ;;  %v258_v0 = vadd.f32 %v1858_v15, %v1924_v62 }
 0x879   :  { %1586 = vmatpush3.bf16.msra.mxu0 %v1837_v13 }
 0x947   :  { %v1067_v54 = vpop.f32.mrb[18].mxu0 }
 0x948   :  { %v1071_v55 = vadd.f32 %v1067_v54, %v253_v53  ;;  %v1488_v56 = vpop.f32.mrb[19].mxu0 }
 0x94a   :  { %1614 = vtanh.f32 %v1071_v55 }
 0x954   :  { %v1615_v57 = vpop.eup %1614 }
 0x955   :  { %v1073_v58 = vsub.f32 %v1615_v57, %v995_v52 }
 0x957   :  { %v1074_v60 = vmul.f32 %v1864_v23, %v1073_v58 }
 0x959   :  { %v1075_v63 = vadd.f32 %v1074_v60, %v995_v52 }
 0x95b   :  { %1278 = vst.msk [vmem:[%s2034_s6 + $0x48] sm:$0xff] %vm81_vm2, %v1075_v63  ;;  %1498 = vmatmul.mubr.msk.f32.vlgmr.msra.gmra.mrb[12].mxu1 %vm81_vm2, %v1075_v63 }
 0xa2e   :  { %v1147_v1 = vpop.f32.mrb[12].mxu1 }
 0xa2f   :  { %v1151_v8 = vadd.f32 %v1147_v1, %v258_v0  ;;  %v1499_v13 = vpop.f32.mrb[13].mxu1 }
 0xa31   :  { %1616 = vtanh.f32 %v1151_v8 }
 0xa3b   :  { %v1617_v59 = vpop.eup %1616 }
 0xa3c   :  { %v1153_v2 = vsub.f32 %v1617_v59, %v1075_v63 }
 0xa3e   :  { %v1154_v3 = vmul.f32 %v1864_v23, %v1153_v2 }
 0xa40   :  { %v1155_v4 = vadd.f32 %v1154_v3, %v1075_v63 }
 0xa42   :  { %1280 = vst.msk [vmem:[%s2034_s6 + $0x50] sm:$0xff] %vm81_vm2, %v1155_v4  ;;  %1509 = vmatmul.mubr.msk.f32.vlgmr.msra.gmra.mrb[20].mxu0 %vm81_vm2, %v1155_v4 }
 0xb15   :  { %v1227_v62 = vpop.f32.mrb[20].mxu0 }
 0xb16   :  { %v1231_v6 = vadd.f32 %v1227_v62, %v263_v5  ;;  %v1510_v7 = vpop.f32.mrb[21].mxu0 }
 0xb18   :  { %1618 = vtanh.f32 %v1231_v6 }
 0xb22   :  { %v1619_v9 = vpop.eup %1618 }
 0xb23   :  { %v1233_v10 = vsub.f32 %v1619_v9, %v1155_v4 }
 0xb25   :  { %v1234_v11 = vmul.f32 %v1864_v23, %v1233_v10 }
 0xb27   :  { %v1235_v12 = vadd.f32 %v1234_v11, %v1155_v4 }
 0xb29   :  { %1282 = vst.msk [vmem:[%s2034_s6 + $0x58] sm:$0xff] %vm81_vm2, %v1235_v12  ;;  %1238 = vst.msk [vmem:[#allocation2] sm:$0xff] %vm81_vm2, %v1235_v12 }
 0xb2a   :  { %1243 = vsyncpa [#allocation4], 1 }
 0xb2b   :  { %1244 = vsyncpa [#allocation6], 1 }
 0xb2c   :  { %1245 = vsyncpa [#allocation9], 1 }

</bundles_post_ra>
